<compile_context>
chip_gen: v7x
topology: tpu7x:2x2x1
jax: 0.10.0
libtpu: 0.0.40
codegen_flags: <defaults>
</compile_context>

<pallas_src>
import functools
import math

import jax
import jax.numpy as jnp
from jax import lax
from jax.experimental import pallas as pl
from jax.experimental.pallas import tpu as pltpu

_TQ = 8  # the module's forward only returns tokens 0..3; pad to one sublane tile


def _const_map(ndim):
    return lambda *_: (0,) * ndim


@functools.lru_cache(maxsize=None)
def _vmem_limit_bytes():
    # v5e/v6e: 128 MiB physical -> ~100 MiB scoped; v7x: 64 MiB -> ~48 MiB.
    try:
        cap = int(pltpu.get_tpu_info().vmem_capacity_bytes)
    except Exception:
        cap = 64 * 1024 * 1024  # conservative (v7x physical size)
    return max(16 * 1024 * 1024, min(cap - 16 * 1024 * 1024, 100 * 1024 * 1024))


def _round_up(n, m):
    return -(-n // m) * m


# ----------------------------------------------------------------------------
# Conv1d(kernel_size=1, bias=False)  ==  per-token matmul
# ----------------------------------------------------------------------------

def _proj_kernel(x_ref, w_ref, o_ref):
    # bf16 MXU inputs, f32 accumulation; output lane dim = embed_dim (128-aligned).
    o_ref[...] = jnp.dot(x_ref[...].astype(jnp.bfloat16), w_ref[...],
                         preferred_element_type=jnp.float32)


def project(x, w):
    """x: (B, L, K) f32, w: (K, E) bf16  ->  (B, L, E) f32."""
    B, L, K = x.shape
    E = w.shape[1]
    N = B * L
    x2 = x.reshape(N, K)
    # Row tile (multiple of 8); pad N up to a multiple of the tile so every
    # block is full and double-buffered regardless of N.
    blk = 512 if N >= 512 else _round_up(N, 8)
    n_pad = _round_up(N, blk)
    if n_pad != N:
        x2 = jnp.pad(x2, ((0, n_pad - N), (0, 0)))
    out = pl.pallas_call(
        _proj_kernel,
        out_shape=jax.ShapeDtypeStruct((n_pad, E), jnp.float32),
        grid=(n_pad // blk,),
        in_specs=[pl.BlockSpec((blk, K), lambda i: (i, 0)),
                  pl.BlockSpec((K, E), lambda i: (0, 0))],
        out_specs=pl.BlockSpec((blk, E), lambda i: (i, 0)),
        compiler_params=pltpu.CompilerParams(
            dimension_semantics=("parallel",),
            vmem_limit_bytes=_vmem_limit_bytes()),
    )(x2, w)
    if n_pad != N:
        out = out[:N]
    return out.reshape(B, L, E)


# ----------------------------------------------------------------------------
# Fused cls-embed + final EncoderLayer (only tokens 0..3 are produced)
# ----------------------------------------------------------------------------

def _encoder_kernel(a_ref, t_ref, v_ref, cls_ref,
                    wqkv_ref, wo_ref, w1_ref, w2_ref, bias_ref, b1_ref,
                    o_ref, x_s, *, n_head, eps, s_real, la, lt, lv):
    S_pad, E = x_s.shape
    H = n_head
    Dh = E // H
    TQ = o_ref.shape[1]

    # --- assemble [video_cls, text_cls, audio_cls, fusion_cls, a, t, v] in
    #     VMEM (no HBM concat round trip); zero the padding rows -------------
    x_s[0:4, :] = cls_ref[...]
    x_s[4:4 + la, :] = a_ref[0]
    x_s[4 + la:4 + la + lt, :] = t_ref[0]
    x_s[4 + la + lt:4 + la + lt + lv, :] = v_ref[0]
    if S_pad > s_real:
        x_s[s_real:, :] = jnp.zeros((S_pad - s_real, E), jnp.float32)

    x = x_s[...]                                  # (S_pad, E) f32
    xb = x.astype(jnp.bfloat16)
    bias = bias_ref[...]                          # (9, E) f32

    # --- QKV: K/V for every token from the fused (E, 2E) slab columns;
    #     Q only for the 8-row output tile (scale folded into the weights) ---
    kv = jnp.dot(xb, wqkv_ref[:, E:], preferred_element_type=jnp.float32)   # (S_pad, 2E)
    k = (kv[:, :E] + bias[1:2]).astype(jnp.bfloat16)
    v = (kv[:, E:] + bias[2:3]).astype(jnp.bfloat16)
    q = (jnp.dot(xb[:TQ], wqkv_ref[:, :E], preferred_element_type=jnp.float32)
         + bias[0:1]).astype(jnp.bfloat16)                                  # (TQ, E)

    # one reshape + one transpose per tensor (leading-batch head layout)
    qh = jnp.transpose(q.reshape(TQ, H, Dh), (1, 0, 2))        # (H, TQ, Dh)
    kh = jnp.transpose(k.reshape(S_pad, H, Dh), (1, 0, 2))     # (H, S_pad, Dh)
    vh = jnp.transpose(v.reshape(S_pad, H, Dh), (1, 0, 2))     # (H, S_pad, Dh)

    sc = lax.dot_general(qh, kh, (((2,), (2,)), ((0,), (0,))),
                         preferred_element_type=jnp.float32)   # (H, TQ, S_pad)
    if S_pad > s_real:
        kmask = lax.broadcasted_iota(jnp.int32, (1, 1, S_pad), 2) < s_real
        sc = jnp.where(kmask, sc, -1e30)
    sc = sc - jnp.max(sc, axis=-1, keepdims=True)
    p = jnp.exp(sc)
    p = p * pl.reciprocal(jnp.sum(p, axis=-1, keepdims=True), approx=True)

    ctx = lax.dot_general(p.astype(jnp.bfloat16), vh,
                          (((2,), (1,)), ((0,), (0,))),
                          preferred_element_type=jnp.float32)  # (H, TQ, Dh)
    ctx = jnp.transpose(ctx, (1, 0, 2)).reshape(TQ, E)         # head concat

    # single K=E output projection against the un-split Wo
    attn = jnp.dot(ctx.astype(jnp.bfloat16), wo_ref[...],
                   preferred_element_type=jnp.float32) + bias[3:4]

    # --- residual + LayerNorm 1 (dropout = identity at inference) -----------
    h1 = x[:TQ] + attn
    mu = jnp.mean(h1, axis=-1, keepdims=True)
    var = jnp.mean((h1 - mu) ** 2, axis=-1, keepdims=True)
    h1 = (h1 - mu) * lax.rsqrt(var + eps) * bias[4:5] + bias[5:6]

    # --- position-wise FFN (8 rows only) ------------------------------------
    f = jnp.dot(h1.astype(jnp.bfloat16), w1_ref[...],
                preferred_element_type=jnp.float32) + b1_ref[...]
    f = jnp.maximum(f, 0.0)
    f = jnp.dot(f.astype(jnp.bfloat16), w2_ref[...],
                preferred_element_type=jnp.float32) + bias[6:7]

    # --- residual + LayerNorm 2 ----------------------------------------------
    h2 = h1 + f
    mu2 = jnp.mean(h2, axis=-1, keepdims=True)
    var2 = jnp.mean((h2 - mu2) ** 2, axis=-1, keepdims=True)
    o_ref[0] = (h2 - mu2) * lax.rsqrt(var2 + eps) * bias[7:8] + bias[8:9]


def _encoder_call(a, t, v, cls, layer_args, n_head, eps, single_buffer_weights):
    B, la, E = a.shape
    lt, lv = t.shape[1], v.shape[1]
    s_real = 4 + la + lt + lv
    s_pad = _round_up(s_real, 8)
    wqkv, wo, w1, w2, bias_slab, b1 = layer_args

    def wspec(arr):
        # Weights never change across the batch grid: single-buffer them to
        # halve their VMEM footprint (most important on v7x's 64 MiB VMEM).
        if single_buffer_weights:
            return pl.BlockSpec(arr.shape, _const_map(arr.ndim),
                                pipeline_mode=pl.Buffered(1))
        return pl.BlockSpec(arr.shape, _const_map(arr.ndim))

    kern = functools.partial(_encoder_kernel, n_head=n_head, eps=eps,
                             s_real=s_real, la=la, lt=lt, lv=lv)
    return pl.pallas_call(
        kern,
        out_shape=jax.ShapeDtypeStruct((B, _TQ, E), jnp.float32),
        grid=(B,),
        in_specs=[
            pl.BlockSpec((1, la, E), lambda b: (b, 0, 0)),
            pl.BlockSpec((1, lt, E), lambda b: (b, 0, 0)),
            pl.BlockSpec((1, lv, E), lambda b: (b, 0, 0)),
            pl.BlockSpec(cls.shape, _const_map(2)),
            wspec(wqkv), wspec(wo), wspec(w1), wspec(w2),
            pl.BlockSpec(bias_slab.shape, _const_map(2)),
            pl.BlockSpec(b1.shape, _const_map(2)),
        ],
        out_specs=pl.BlockSpec((1, _TQ, E), lambda b: (b, 0, 0)),
        scratch_shapes=[pltpu.VMEM((s_pad, E), jnp.float32)],
        compiler_params=pltpu.CompilerParams(
            # batch axis shards across v7x's two TensorCores; cheap serial
            # loop on v5e/v6e.  Constant weight index_maps keep the bf16
            # weights VMEM-resident across the batch grid.
            dimension_semantics=("parallel",),
            vmem_limit_bytes=_vmem_limit_bytes()),
    )(a, t, v, cls, wqkv, wo, w1, w2, bias_slab, b1)


def fused_cls_encoder(a, t, v, cls, layer_args, n_head, eps=1e-12):
    try:
        return _encoder_call(a, t, v, cls, layer_args, n_head, eps, True)
    except Exception:
        # Fallback if this jax build rejects pipeline_mode=pl.Buffered(1).
        return _encoder_call(a, t, v, cls, layer_args, n_head, eps, False)


# ----------------------------------------------------------------------------
# Parameters (deterministic, synthetic)
# ----------------------------------------------------------------------------

def init_params(key, *, embed_dim, n_head, n_layers, feature_dims, seq_lens,
                mlp_ratio=4):
    text_in, audio_in, video_in = feature_dims
    _, audio_len, video_len = seq_lens
    E, Hf = embed_dim, embed_dim * mlp_ratio
    Dh = E // n_head
    scale = 1.0 / math.sqrt(Dh)
    s = 0.05
    keys = iter(jax.random.split(key, 8 + 16 * n_layers))

    def nk():
        return next(keys)

    def w(shape, std=s):
        # Weight values are bf16-representable (canonical f32 copy == bf16
        # values) so the pure-f32 reference and the bf16 kernel share weights.
        return (jax.random.normal(nk(), shape) * std).astype(jnp.bfloat16).astype(jnp.float32)

    def b(shape, std=0.02):
        return (jax.random.normal(nk(), shape) * std).astype(jnp.float32)

    params = {
        "embed_dim": E,
        "n_head": n_head,
        # cls tokens are zero-initialized in the reference __init__; packed as
        # one (4, E) slab in prepend order: video, text, audio, fusion.
        "cls": jnp.zeros((4, E), jnp.float32),
        # pos embeds exist in __init__ but are unused by forward
        "audio_pos": b((1, audio_len, E)),
        "video_pos": b((1, video_len, E)),
        # Conv1d(kernel=1, bias=False) weights, stored as (in, E) bf16
        "proj_t": w((text_in, E)).astype(jnp.bfloat16),
        "proj_a": w((audio_in, E)).astype(jnp.bfloat16),
        "proj_v": w((video_in, E)).astype(jnp.bfloat16),
        "layers": [],       # packed kernel args
        "layers_ref": [],   # canonical f32 params for the reference
    }

    for _ in range(n_layers):
        wq, wk, wv, wo = w((E, E)), w((E, E)), w((E, E)), w((E, E))
        w1, w2 = w((E, Hf)), w((Hf, E))
        bq, bk, bv, bo = b((1, E)), b((1, E)), b((1, E)), b((1, E))
        bb1, bb2 = b((1, Hf)), b((1, E))
        g1 = 1.0 + b((1, E), 0.05)
        be1 = b((1, E))
        g2 = 1.0 + b((1, E), 0.05)
        be2 = b((1, E))
        params["layers_ref"].append(
            (wq, bq, wk, bk, wv, bv, wo, bo, g1, be1, w1, bb1, w2, bb2, g2, be2))

        # Fused (E, 3E) QKV slab, 1/sqrt(Dh) folded into the q columns/bias.
        wqkv = jnp.concatenate([wq * scale, wk, wv], axis=1).astype(jnp.bfloat16)
        # Nine E-wide bias/LN params packed into one (9, E) f32 slab:
        # [bq*scale, bk, bv, bo, g1, be1, b2, g2, be2]; the (1, 4E) FFN bias
        # b1 stays separate (different lane width).
        bias_slab = jnp.concatenate(
            [bq * scale, bk, bv, bo, g1, be1, bb2, g2, be2], axis=0)
        params["layers"].append(
            (wqkv, wo.astype(jnp.bfloat16), w1.astype(jnp.bfloat16),
             w2.astype(jnp.bfloat16), bias_slab, bb1))
    return params


# ----------------------------------------------------------------------------
# MMTrans forward
# ----------------------------------------------------------------------------

def mmtrans_forward(audio_h, text_h, video_h, params):
    E = params["embed_dim"]
    # Matches the PyTorch module: projection is skipped if the feature dim
    # already equals embed_dim.
    a = audio_h if audio_h.shape[2] == E else project(audio_h, params["proj_a"])
    t = text_h if text_h.shape[2] == E else project(text_h, params["proj_t"])
    v = video_h if video_h.shape[2] == E else project(video_h, params["proj_v"])

    # Only the final EncoderLayer's tokens 0..3 are observable in the module's
    # forward, so only those are computed (identical returned values).
    out = fused_cls_encoder(a, t, v, params["cls"], params["layers"][-1],
                            params["n_head"])
    return out[:, 0, :], out[:, 1, :], out[:, 2, :], out[:, 3, :]


# ----------------------------------------------------------------------------
# Pure-JAX f32 reference (correctness check only)
# ----------------------------------------------------------------------------

def _ref_layer(x, p, n_head, eps=1e-12):
    (wq, bq, wk, bk, wv, bv, wo, bo, g1, be1, w1, bb1, w2, bb2, g2, be2) = p
    B, S, E = x.shape
    Dh = E // n_head

    def split(z):
        return z.reshape(B, S, n_head, Dh).transpose(0, 2, 1, 3)

    q, k, v = split(x @ wq + bq), split(x @ wk + bk), split(x @ wv + bv)
    sc = jnp.einsum("bhqd,bhkd->bhqk", q, k) / math.sqrt(Dh)
    pr = jax.nn.softmax(sc, axis=-1)
    attn = jnp.einsum("bhqk,bhkd->bhqd", pr, v).transpose(0, 2, 1, 3).reshape(B, S, E)
    attn = attn @ wo + bo

    h1 = x + attn
    mu = h1.mean(-1, keepdims=True)
    var = ((h1 - mu) ** 2).mean(-1, keepdims=True)
    h1 = (h1 - mu) / jnp.sqrt(var + eps) * g1 + be1

    f = jnp.maximum(h1 @ w1 + bb1, 0.0) @ w2 + bb2
    h2 = h1 + f
    mu2 = h2.mean(-1, keepdims=True)
    var2 = ((h2 - mu2) ** 2).mean(-1, keepdims=True)
    return (h2 - mu2) / jnp.sqrt(var2 + eps) * g2 + be2


def mmtrans_ref(audio_h, text_h, video_h, params):
    E = params["embed_dim"]

    def maybe_proj(h, w):
        return h if h.shape[2] == E else h @ w.astype(jnp.float32)

    a = maybe_proj(audio_h, params["proj_a"])
    t = maybe_proj(text_h, params["proj_t"])
    v = maybe_proj(video_h, params["proj_v"])
    co = jnp.concatenate([a, t, v], axis=1)
    B = co.shape[0]
    cls = jnp.broadcast_to(params["cls"][None], (B, 4, E))
    co = jnp.concatenate([cls, co], axis=1)
    x = co
    for lp in params["layers_ref"]:      # mirrors the PyTorch loop; last wins
        x = _ref_layer(co, lp, params["n_head"])
    return x[:, 0, :], x[:, 1, :], x[:, 2, :], x[:, 3, :]


# ----------------------------------------------------------------------------
# Main
# ----------------------------------------------------------------------------

if __name__ == "__main__":
    # Small, module-consistent configuration (embed_dim shrunk 768 -> 128 to
    # keep the synthetic test small while staying 128-lane aligned).
    B = 2
    seq_lens = (6, 5, 7)          # (text, audio, video)
    feature_dims = (24, 20, 16)   # (text_in, audio_in, video_in)
    embed_dim = 128
    n_head = 4
    n_layers = 2

    key = jax.random.PRNGKey(0)
    kp, ka, kt, kvid = jax.random.split(key, 4)
    params = init_params(kp, embed_dim=embed_dim, n_head=n_head,
                         n_layers=n_layers, feature_dims=feature_dims,
                         seq_lens=seq_lens)

    text_len, audio_len, video_len = seq_lens
    text_in, audio_in, video_in = feature_dims
    audio_h = jax.random.normal(ka, (B, audio_len, audio_in), jnp.float32)
    text_h = jax.random.normal(kt, (B, text_len, text_in), jnp.float32)
    video_h = jax.random.normal(kvid, (B, video_len, video_in), jnp.float32)

    outs = mmtrans_forward(audio_h, text_h, video_h, params)
    outs = jax.block_until_ready(outs)

    refs = mmtrans_ref(audio_h, text_h, video_h, params)
    # Tolerance accounts for bf16 MXU inputs + approx reciprocal in the kernel
    # vs. the pure-f32 reference (outputs are O(1) post-LayerNorm).
    for o, r in zip(outs, refs):
        assert o.shape == (B, embed_dim)
        err = float(jnp.max(jnp.abs(o - r)))
        assert err < 5e-2, f"Pallas output mismatch vs reference (max abs err {err})"

    print("KERNEL_OK")
</pallas_src>

<mosaic_0001>
module attributes {stable_mosaic.version = 11 : i64} {
  func.func @_proj_kernel(%arg0: i32, %arg1: memref<16x20xf32, #tpu.memory_space<vmem>>, %arg2: memref<20x128xbf16, #tpu.memory_space<vmem>>, %arg3: memref<16x128xf32, #tpu.memory_space<vmem>>) attributes {dimension_semantics = [#tpu.dimension_semantics<parallel>], iteration_bounds = array<i64: 1>, scalar_prefetch = 0 : i64, scratch_operands = 0 : i64, tpu.core_type = #tpu.core_type<tc>, window_params = [{transform_indices = @transform_0, window_bounds = array<i64: 16, 20>}, {pipeline_mode = #tpu.pipeline_mode<synchronous>, transform_indices = @transform_1, window_bounds = array<i64: 20, 128>}, {transform_indices = @transform_2, window_bounds = array<i64: 16, 128>}]} {
    %c0 = arith.constant 0 : index
    %c0_0 = arith.constant 0 : index
    %0 = vector.load %arg1[%c0, %c0_0] : memref<16x20xf32, #tpu.memory_space<vmem>>, vector<16x20xf32>
    %1 = arith.truncf %0 : vector<16x20xf32> to vector<16x20xbf16>
    %c0_1 = arith.constant 0 : index
    %c0_2 = arith.constant 0 : index
    %2 = vector.load %arg2[%c0_1, %c0_2] : memref<20x128xbf16, #tpu.memory_space<vmem>>, vector<20x128xbf16>
    %cst = arith.constant dense<0.000000e+00> : vector<16x128xf32>
    %3 = tpu.matmul %1, %2, %cst {dimension_numbers = #tpu.dot_dimension_numbers<[1], [0], [0], [1], [0, 0, 1, 1], [], []>} : vector<16x20xbf16>, vector<20x128xbf16>, vector<16x128xf32> -> vector<16x128xf32>
    %c0_3 = arith.constant 0 : index
    %c0_4 = arith.constant 0 : index
    %4 = vector.load %arg3[%c0_3, %c0_4] : memref<16x128xf32, #tpu.memory_space<vmem>>, vector<16x128xf32>
    tpu.vector_store %arg3[%c0_3, %c0_4], %3 {strides = array<i32>} : memref<16x128xf32, #tpu.memory_space<vmem>>, vector<16x128xf32>,
    return
  }
  func.func @transform_0(%arg0: i32) -> (i32, i32) {
    %c0_i32 = arith.constant 0 : i32
    %c0_i32_0 = arith.constant 0 : i32
    return %arg0, %c0_i32 : i32, i32
  }
  func.func @transform_1(%arg0: i32) -> (i32, i32) {
    %c0_i32 = arith.constant 0 : i32
    %c0_i32_0 = arith.constant 0 : i32
    %c0_i32_1 = arith.constant 0 : i32
    return %c0_i32, %c0_i32_0 : i32, i32
  }
  func.func @transform_2(%arg0: i32) -> (i32, i32) {
    %c0_i32 = arith.constant 0 : i32
    %c0_i32_0 = arith.constant 0 : i32
    return %arg0, %c0_i32 : i32, i32
  }
}

</mosaic_0001>

<bundles_post_ra>
// kernel: tpu_custom_call.1
= control target key start
LH: loop header
LB: loop body
LE: loop exit
PB: predicated region body
PF: predicated region fallthrough
CT: control target
= control target key end

     0   :  { %7 = vsyncpa [#allocation3], 0  ;;  %s288_s0 = inlined_call_operand.hbm [shape: f32[16,20], index: 0, kind: input, shape index: {}]   ;;  %s289_s1 = inlined_call_operand.hbm [shape: bf16[20,128], index: 1, kind: input, shape index: {}]   ;;  %s290_s2 = inlined_call_operand.hbm [shape: f32[16,128], index: 2, kind: output, shape index: {}]  }
   0x1   :  { %8 = vsyncpa [#allocation6], 0 }
   0x2   :  { %9 = vsyncpa [#allocation4], 0  ;;  %s222_s9 = smov [#allocation2]   ;;  %s150_s13 = scalar_lea.hbm %s288_s0, 256 }
   0x3   :  { %s15_s10 = sshll.u32 %s222_s9, 4  ;;  %p151_p0 = scmp.ne.s32.totalorder %s288_s0, %s150_s13  ;;  %s16_s10 = int_to_ptr.vmem [resolvable:$true] %s15_s10 }
   0x4   :  { %p154_p1 = scmp.lt.u32.totalorder %s150_s13, %s288_s0 }
   0x6   :  { %p156_p2 = pnand %p154_p1, %p151_p0 }
   0x8   :  { %159 = shalt.err (!%p156_p2)
}
   0x9   :  { %s160_s18 = scalar_lea.vmem %s16_s10, 256  ;;  %p165_p4 = scmp.lt.s32.totalorder %s16_s10, %s16_s10 }
   0xa   :  { %p161_p3 = scmp.ne.s32.totalorder %s16_s10, %s160_s18  ;;  %p166_p5 = scmp.lt.s32.totalorder %s160_s18, %s160_s18 }
   0xc   :  { %p167_p6 = por %p166_p5, %p165_p4 }
   0xe   :  { %p168_p7 = pnand %p167_p6, %p161_p3 }
  0x10   :  { %171 = shalt.err (!%p168_p7)
}
  0x11   :  { %s223_s19 = smov 128   ;;  %s224_s20 = smov 8  }
  0x12   :  { %21 = dma.hbm_to_vmem [thread:$0]  %s288_s0, 256, %s16_s10, [#allocation3], %s223_s19, %s223_s19, %s224_s20  }
  0x13   :  { %s225_s23 = smov [#allocation5]   ;;  %s172_s27 = scalar_lea.hbm %s289_s1, 192 }
  0x14   :  { %s27_s24 = sshll.u32 %s225_s23, 4  ;;  %p173_p8 = scmp.ne.s32.totalorder %s289_s1, %s172_s27  ;;  %s28_s24 = int_to_ptr.vmem [resolvable:$true] %s27_s24 }
  0x15   :  { %p176_p9 = scmp.lt.u32.totalorder %s172_s27, %s289_s1 }
  0x17   :  { %p178_p10 = pnand %p176_p9, %p173_p8 }
  0x19   :  { %181 = shalt.err (!%p178_p10)
}
  0x1a   :  { %s182_s4 = scalar_lea.vmem %s28_s24, 192  ;;  %p187_p12 = scmp.lt.s32.totalorder %s28_s24, %s28_s24 }
  0x1b   :  { %p183_p11 = scmp.ne.s32.totalorder %s28_s24, %s182_s4  ;;  %p188_p13 = scmp.lt.s32.totalorder %s182_s4, %s182_s4 }
  0x1d   :  { %p189_p0 = por %p188_p13, %p187_p12 }
  0x1f   :  { %p190_p1 = pnand %p189_p0, %p183_p11 }
  0x21   :  { %193 = shalt.err (!%p190_p1)
}
  0x22   :  { %s226_s0 = smov 64   ;;  %s227_s5 = smov 4  }
  0x23   :  { %33 = dma.hbm_to_vmem [thread:$0]  %s289_s1, 192, %s28_s24, [#allocation6], %s226_s0, %s226_s0, %s227_s5  }
  0x24   :  { %216 = dma.done.wait [#allocation3], 256  }
  0x25   :  { %217 = vsyncadd [#allocation3], 4294967040 }
  0x26   :  { %218 = dma.done.wait [#allocation6], 192  }
  0x27   :  { %219 = vsyncadd [#allocation6], 4294967104  ;;  %v228_v0 = vmov 0.0   ;;  %vm229_vm0 = vmmov 0   ;;  %v148_v1 = vld [vmem:[#allocation5] sm:$0xff]   ;;  %vm60_vm1 = vcmask 1041408  }
  0x28   :  { %131 = vmatprep.subr.bf16.mxu0 %v228_v0  ;;  %135 = vmatprep.mubr.msk.bf16.mxu0 %vm229_vm0, %v228_v0  ;;  %v149_v2 = vld [vmem:[#allocation5 + $0x8] ss:$0 sps:$4 sm:$0x33]   ;;  %v41_v3 = vld [vmem:[#allocation2] sm:$0xff]  ;;  %v42_v4 = vld [vmem:[#allocation2 + $0x8] sm:$0xff]  ;;  %vm56_vm2 = vcmask 162816  }
  0x29   :  { %132 = vmatpush3.bf16.msra.mxu0 %v148_v1  ;;  %v62_v5 = vsel %vm60_vm1, %v149_v2, 0  ;;  %v43_v6 = vpack.c.bf16 %v42_v4, %v41_v3  ;;  %s230_s1 = smov [#allocation7]  }
  0x2a   :  { %133 = vmatprep.subr.bf16.mxu0 %v228_v0  ;;  %s112_s8 = sshll.u32 %s230_s1, 4  ;;  %s113_s8 = int_to_ptr.vmem [resolvable:$true] %s112_s8 }
  0x2b   :  { %s194_s9 = scalar_lea.vmem %s113_s8, 256  ;;  %p199_p3 = scmp.lt.s32.totalorder %s113_s8, %s113_s8 }
  0x2c   :  { %p195_p2 = scmp.ne.s32.totalorder %s113_s8, %s194_s9  ;;  %p200_p4 = scmp.lt.s32.totalorder %s194_s9, %s194_s9 }
  0x2d   :  { %134 = vmatpush3.bf16.msra.mxu0 %v62_v5 }
  0x2e   :  { %p201_p5 = por %p200_p4, %p199_p3 }
  0x30   :  { %136 = vmatmul.mubr.msk.bf16.vlgmr.msra.gmra.mrb[0].mxu0 %vm56_vm2, %v43_v6  ;;  %p202_p6 = pnand %p201_p5, %p195_p2 }
 0x103   :  { %v98_v7 = vpop.f32.mrb[0].mxu0 }
 0x104   :  { %105 = vst [vmem:[#allocation7] sm:$0xff] %v98_v7  ;;  %v137_v8 = vpop.f32.mrb[1].mxu0 }
 0x105   :  { %v101_v9 = vpop.f32.mrb[2].mxu0 }
 0x106   :  { %106 = vst [vmem:[#allocation7 + $0x8] sm:$0xff] %v101_v9  ;;  %v138_v10 = vpop.f32.mrb[3].mxu0 }
 0x107   :  { %205 = shalt.err (!%p202_p6)
}
 0x108   :  { %s206_s12 = scalar_lea.hbm %s290_s2, 256 }
 0x109   :  { %p207_p7 = scmp.ne.s32.totalorder %s290_s2, %s206_s12  ;;  %p210_p8 = scmp.lt.u32.totalorder %s206_s12, %s290_s2 }
 0x10b   :  { %p212_p9 = pnand %p210_p8, %p207_p7 }
 0x10d   :  { %215 = shalt.err (!%p212_p9)
}
 0x10e   :  { %118 = dma.vmem_to_hbm [thread:$0]  %s113_s8, 256, %s290_s2, [#allocation4], %s223_s19, %s223_s19, %s224_s20  }
 0x10f   :  { %220 = dma.done.wait [#allocation4], 256  }
 0x110   :  { %221 = vsyncadd [#allocation4], 4294967040 }
 0x111   :  { %122 = vsyncpa [#allocation3], 1 }
 0x112   :  { %123 = vsyncpa [#allocation6], 1 }
 0x113   :  { %124 = vsyncpa [#allocation4], 1 }

</bundles_post_ra>
